<compile_context>
chip_gen: v5e
topology: v5e:2x2
jax: 0.10.0
libtpu: 0.0.40
codegen_flags: <defaults>
</compile_context>

<pallas_src>
import functools

import jax
import jax.numpy as jnp
from jax import lax
from jax.experimental import pallas as pl
from jax.experimental.pallas import tpu as pltpu

# Make the pure-JAX reference matmuls run in true f32 so the f32 parity check
# is tight (XLA's DEFAULT precision on TPU may otherwise use bf16 passes).
jax.config.update("jax_default_matmul_precision", "highest")

_NEG = -2.0 ** 32 + 1          # same "minus infinity" constant as the PyTorch model
_LN_EPS = 1e-8                 # LayerNorm eps (torch.nn.LayerNorm(..., eps=1e-8))
_VMEM_LIMIT = 48 * 1024 * 1024  # safe on v5e/v6e (128 MiB) and v7x (64 MiB) alike


# ----------------------------- small helpers -----------------------------

def _round_up(x, m):
    return (x + m - 1) // m * m


def _row_tiling(m, align, cap=1024):
    """Row tile (multiple of `align`) and padded row count for row-tiled kernels."""
    for t in (1024, 512, 256, 128, 64, 32, 16, 8):
        if t <= cap and t % align == 0 and m % t == 0:
            return t, m
    tm = min(cap, _round_up(m, align))
    return tm, _round_up(m, tm)


def _q_tile(length, cap=256):
    """Query tile for the attention grid (multiple of 8 dividing L, else full L)."""
    for t in (256, 128, 64, 32, 16, 8):
        if t <= cap and length % t == 0:
            return t
    return length


def _pad_rows(x, mp):
    m = x.shape[0]
    if m == mp:
        return x
    return jnp.pad(x, ((0, mp - m),) + ((0, 0),) * (x.ndim - 1))


# ----------------------------- Pallas kernels -----------------------------

def _ln(x, g, b):
    mu = jnp.mean(x, axis=-1, keepdims=True)
    var = jnp.mean((x - mu) ** 2, axis=-1, keepdims=True)
    return (x - mu) / jnp.sqrt(var + _LN_EPS) * g + b


def _ln_qkv_kernel(x_ref, g_ref, b_ref, qw_ref, qb_ref, kw_ref, kb_ref,
                   vw_ref, vb_ref, xn_ref, q_ref, k_ref, v_ref):
    # Fused attention LayerNorm + Q projection (of the normalized input) +
    # K/V projections (of the raw input).  Four lane-dense outputs, no slab.
    x = x_ref[...]
    xn = _ln(x, g_ref[...], b_ref[...])
    cdt = qw_ref.dtype                                # MXU operand dtype (f32/bf16)
    xn_ref[...] = xn
    q_ref[...] = jnp.dot(xn.astype(cdt), qw_ref[...],
                         preferred_element_type=jnp.float32) + qb_ref[...]
    xc = x.astype(cdt)
    k_ref[...] = jnp.dot(xc, kw_ref[...],
                         preferred_element_type=jnp.float32) + kb_ref[...]
    v_ref[...] = jnp.dot(xc, vw_ref[...],
                         preferred_element_type=jnp.float32) + vb_ref[...]


def _ffn_block_kernel(qln_ref, mha_ref, keep_ref, g_ref, b_ref,
                      w1_ref, b1_ref, w2_ref, b2_ref, o_ref):
    # Fused: residual add + forward LayerNorm + conv1d(k=1) -> relu -> conv1d(k=1)
    # + FFN residual + timeline keep-mask.
    s = qln_ref[...] + mha_ref[...]
    x2 = _ln(s, g_ref[...], b_ref[...])
    cdt = w1_ref.dtype
    h = jnp.dot(x2.astype(cdt), w1_ref[...],
                preferred_element_type=jnp.float32) + b1_ref[...]
    h = jnp.maximum(h, 0.0)
    y = jnp.dot(h.astype(cdt), w2_ref[...],
                preferred_element_type=jnp.float32) + b2_ref[...] + x2
    o_ref[...] = y * keep_ref[...]


def _final_logits_kernel(x_ref, g_ref, b_ref, pos_ref, neg_ref, o_ref):
    # Fused: last LayerNorm + pos/neg logit dot products.
    # Lane-dense output slab: row 0 = pos, row 1 = neg, rows 2..7 zero padding
    # (8 sublanes so the transpose maps onto the native (8, lane) granule).
    f = _ln(x_ref[...], g_ref[...], b_ref[...])
    pos = jnp.sum(f * pos_ref[...], axis=-1, keepdims=True)       # (TM, 1)
    neg = jnp.sum(f * neg_ref[...], axis=-1, keepdims=True)       # (TM, 1)
    zpad = jnp.zeros((f.shape[0], 6), jnp.float32)
    o_ref[...] = jnp.concatenate([pos, neg, zpad], axis=1).T      # (8, TM)


def _attn_kernel(q_ref, k_ref, v_ref, pk_ref, pv_ref, ek_ref, ev_ref,
                 tmat_ref, pad_ref, o_ref, *, heads, hd):
    # One (batch, q-tile) per grid step; all heads packed in the lane dimension.
    tq = q_ref.shape[1]
    kl = k_ref.shape[1]
    t1 = ek_ref.shape[0]
    cdt = ek_ref.dtype                      # MXU operand dtype (f32 or bf16)

    scale = 1.0 / (hd ** 0.5)
    q = q_ref[0] * scale                    # fold softmax scale into q (exact: all
    k = k_ref[0]                            # score terms are linear in q)
    v = v_ref[0]
    kpk = (k + pk_ref[...]).astype(cdt)     # q @ (K + posK)^T fusion
    vpv = (v + pv_ref[...]).astype(cdt)     # p @ (V + posV)   fusion
    ek = ek_ref[...]                        # (T+1, H) time-K table
    ev = ev_ref[...]                        # (T+1, H) time-V table
    tmat = tmat_ref[0]                      # (TQ, L) int32 relative-time buckets
    pad = pad_ref[0]                        # (TQ, 1) float, 1.0 == padding query row

    # bool time-bucket mask, shared by all heads (never materialised in f32).
    t_iota = lax.broadcasted_iota(jnp.int32, (tq, kl, t1), 2)
    tmask = t_iota == tmat[:, :, None]

    # combined causal + padding-query mask, built once outside the head loop.
    q0 = pl.program_id(1) * tq
    row = q0 + lax.broadcasted_iota(jnp.int32, (tq, kl), 0)
    col = lax.broadcasted_iota(jnp.int32, (tq, kl), 1)
    bad = jnp.logical_or(col > row, pad != 0.0)

    dn = (((1,), (1,)), ((), ()))           # contract last dims; no transposed copies

    for h in range(heads):                  # heads is small & static
        sl = slice(h * hd, (h + 1) * hd)
        q_h = q[:, sl].astype(cdt)

        scores = lax.dot_general(q_h, kpk[:, sl], dn,
                                 preferred_element_type=jnp.float32)      # (TQ, L)
        s_t = lax.dot_general(q_h, ek[:, sl], dn,
                              preferred_element_type=jnp.float32)         # (TQ, T+1)
        scores = scores + jnp.sum(
            jnp.where(tmask, s_t[:, None, :], 0.0), axis=-1)              # time-K term

        scores = jnp.where(bad, _NEG, scores)
        scores = scores - jnp.max(scores, axis=-1, keepdims=True)
        e = jnp.exp(scores)
        p = e * pl.reciprocal(jnp.sum(e, axis=-1, keepdims=True), approx=True)

        hist = jnp.sum(jnp.where(tmask, p[:, :, None], 0.0), axis=1)      # (TQ, T+1)
        out_h = jnp.dot(p.astype(cdt), vpv[:, sl],
                        preferred_element_type=jnp.float32)
        out_h = out_h + jnp.dot(hist.astype(cdt), ev[:, sl],
                                preferred_element_type=jnp.float32)       # time-V term
        o_ref[0, :, h * hd:(h + 1) * hd] = out_h                          # stream store


# ----------------------------- Pallas wrappers -----------------------------

def ln_qkv_p(x, g, b, qw, qb, kw, kb, vw, vb):
    m, hid = x.shape
    tm, mp = _row_tiling(m, align=8)
    xp = _pad_rows(x, mp)
    outs = pl.pallas_call(
        _ln_qkv_kernel,
        out_shape=tuple(jax.ShapeDtypeStruct((mp, hid), jnp.float32) for _ in range(4)),
        grid=(mp // tm,),
        in_specs=[pl.BlockSpec((tm, hid), lambda i: (i, 0)),
                  pl.BlockSpec((1, hid), lambda i: (0, 0)),
                  pl.BlockSpec((1, hid), lambda i: (0, 0)),
                  pl.BlockSpec((hid, hid), lambda i: (0, 0)),
                  pl.BlockSpec((1, hid), lambda i: (0, 0)),
                  pl.BlockSpec((hid, hid), lambda i: (0, 0)),
                  pl.BlockSpec((1, hid), lambda i: (0, 0)),
                  pl.BlockSpec((hid, hid), lambda i: (0, 0)),
                  pl.BlockSpec((1, hid), lambda i: (0, 0))],
        out_specs=tuple(pl.BlockSpec((tm, hid), lambda i: (i, 0)) for _ in range(4)),
        compiler_params=pltpu.CompilerParams(
            dimension_semantics=("parallel",), vmem_limit_bytes=_VMEM_LIMIT),
    )(xp, g, b, qw, qb, kw, kb, vw, vb)
    return tuple(o[:m] for o in outs)


def ffn_block_p(qln, mha, keep, g, b, w1, b1, w2, b2):
    m, hid = qln.shape
    tm, mp = _row_tiling(m, align=8)
    qln, mha, keep = (_pad_rows(a, mp) for a in (qln, mha, keep))
    out = pl.pallas_call(
        _ffn_block_kernel,
        out_shape=jax.ShapeDtypeStruct((mp, hid), jnp.float32),
        grid=(mp // tm,),
        in_specs=[pl.BlockSpec((tm, hid), lambda i: (i, 0)),
                  pl.BlockSpec((tm, hid), lambda i: (i, 0)),
                  pl.BlockSpec((tm, 1), lambda i: (i, 0)),
                  pl.BlockSpec((1, hid), lambda i: (0, 0)),
                  pl.BlockSpec((1, hid), lambda i: (0, 0)),
                  pl.BlockSpec((hid, hid), lambda i: (0, 0)),
                  pl.BlockSpec((1, hid), lambda i: (0, 0)),
                  pl.BlockSpec((hid, hid), lambda i: (0, 0)),
                  pl.BlockSpec((1, hid), lambda i: (0, 0))],
        out_specs=pl.BlockSpec((tm, hid), lambda i: (i, 0)),
        compiler_params=pltpu.CompilerParams(
            dimension_semantics=("parallel",), vmem_limit_bytes=_VMEM_LIMIT),
    )(qln, mha, keep, g, b, w1, b1, w2, b2)
    return out[:m]


def final_logits_p(x, g, b, pos, neg):
    m, hid = x.shape
    tm, mp = _row_tiling(m, align=128)          # row dim becomes the lane dim below
    x, pos, neg = (_pad_rows(a, mp) for a in (x, pos, neg))
    out = pl.pallas_call(
        _final_logits_kernel,
        out_shape=jax.ShapeDtypeStruct((8, mp), jnp.float32),
        grid=(mp // tm,),
        in_specs=[pl.BlockSpec((tm, hid), lambda i: (i, 0)),
                  pl.BlockSpec((1, hid), lambda i: (0, 0)),
                  pl.BlockSpec((1, hid), lambda i: (0, 0)),
                  pl.BlockSpec((tm, hid), lambda i: (i, 0)),
                  pl.BlockSpec((tm, hid), lambda i: (i, 0))],
        out_specs=pl.BlockSpec((8, tm), lambda i: (0, i)),
        compiler_params=pltpu.CompilerParams(
            dimension_semantics=("parallel",), vmem_limit_bytes=_VMEM_LIMIT),
    )(x, g, b, pos, neg)
    return out[0, :m], out[1, :m]


def attention_p(Q, K, V, pk, pv, ek, ev, tmat, pad, heads):
    B, L, H = Q.shape
    t1 = ek.shape[0]
    assert H % heads == 0
    hd = H // heads
    tq = _q_tile(L)
    kernel = functools.partial(_attn_kernel, heads=heads, hd=hd)
    return pl.pallas_call(
        kernel,
        out_shape=jax.ShapeDtypeStruct((B, L, H), jnp.float32),
        grid=(B, L // tq),
        in_specs=[
            pl.BlockSpec((1, tq, H), lambda b, qi: (b, qi, 0)),   # Q (q-tile)
            pl.BlockSpec((1, L, H), lambda b, qi: (b, 0, 0)),     # K (full per batch)
            pl.BlockSpec((1, L, H), lambda b, qi: (b, 0, 0)),     # V
            pl.BlockSpec((L, H), lambda b, qi: (0, 0)),           # abs_pos_K (shared)
            pl.BlockSpec((L, H), lambda b, qi: (0, 0)),           # abs_pos_V
            pl.BlockSpec((t1, H), lambda b, qi: (0, 0)),          # time_K table
            pl.BlockSpec((t1, H), lambda b, qi: (0, 0)),          # time_V table
            pl.BlockSpec((1, tq, L), lambda b, qi: (b, qi, 0)),   # time buckets (int32)
            pl.BlockSpec((1, tq, 1), lambda b, qi: (b, qi, 0)),   # padding-query mask
        ],
        out_specs=pl.BlockSpec((1, tq, H), lambda b, qi: (b, qi, 0)),
        compiler_params=pltpu.CompilerParams(
            dimension_semantics=("parallel", "parallel"),
            vmem_limit_bytes=_VMEM_LIMIT),
    )(Q, K, V, pk, pv, ek, ev, tmat, pad)


# ----------------------------- pure-JAX reference -----------------------------

def _ln_ref(x, g, b):
    mu = x.mean(-1, keepdims=True)
    var = ((x - mu) ** 2).mean(-1, keepdims=True)
    return (x - mu) / jnp.sqrt(var + _LN_EPS) * g + b


def _attn_ref(Q, K, V, pK, pV, tK, tV, tlmask, heads):
    B, L, H = Q.shape
    hd = H // heads
    sp3 = lambda x: jnp.concatenate(jnp.split(x, heads, axis=2), axis=0)
    sp4 = lambda x: jnp.concatenate(jnp.split(x, heads, axis=3), axis=0)
    Q_, K_, V_ = sp3(Q), sp3(K), sp3(V)
    pK_, pV_ = sp3(pK), sp3(pV)
    tK_, tV_ = sp4(tK), sp4(tV)
    attn = jnp.einsum('bld,bmd->blm', Q_, K_) + jnp.einsum('bld,bmd->blm', Q_, pK_)
    attn = attn + jnp.einsum('blmd,bld->blm', tK_, Q_)
    attn = attn / (hd ** 0.5)
    tm = jnp.tile(tlmask[:, :, None], (heads, 1, L))
    causal = ~jnp.tril(jnp.ones((L, L), dtype=bool))
    attn = jnp.where(tm, _NEG, attn)
    attn = jnp.where(causal[None], _NEG, attn)
    attn = jax.nn.softmax(attn, axis=-1)
    out = jnp.einsum('blm,bmd->bld', attn, V_) + jnp.einsum('blm,bmd->bld', attn, pV_)
    out = out + jnp.einsum('blm,blmd->bld', attn, tV_)
    return jnp.concatenate(jnp.split(out, heads, axis=0), axis=2)


# ----------------------------- model glue -----------------------------

def init_params(key, item_num, time_span, maxlen, hidden, num_blocks):
    def nrm(k, shape, scale=0.02):
        return scale * jax.random.normal(k, shape, dtype=jnp.float32)

    keys = iter(jax.random.split(key, 5 + num_blocks * 10))
    item_emb = nrm(next(keys), (item_num + 1, hidden)).at[0].set(0.0)  # padding_idx=0
    params = dict(
        item_emb=item_emb,
        abs_pos_K_emb=nrm(next(keys), (maxlen, hidden)),
        abs_pos_V_emb=nrm(next(keys), (maxlen, hidden)),
        time_matrix_K_emb=nrm(next(keys), (time_span + 1, hidden)),
        time_matrix_V_emb=nrm(next(keys), (time_span + 1, hidden)),
        last_ln_g=jnp.ones((1, hidden), jnp.float32),
        last_ln_b=jnp.zeros((1, hidden), jnp.float32),
        blocks=[],
    )
    for _ in range(num_blocks):
        blk = dict(
            attn_ln_g=jnp.ones((1, hidden), jnp.float32),
            attn_ln_b=jnp.zeros((1, hidden), jnp.float32),
            Qw=nrm(next(keys), (hidden, hidden)), Qb=nrm(next(keys), (1, hidden)),
            Kw=nrm(next(keys), (hidden, hidden)), Kb=nrm(next(keys), (1, hidden)),
            Vw=nrm(next(keys), (hidden, hidden)), Vb=nrm(next(keys), (1, hidden)),
            fwd_ln_g=jnp.ones((1, hidden), jnp.float32),
            fwd_ln_b=jnp.zeros((1, hidden), jnp.float32),
            ffn_w1=nrm(next(keys), (hidden, hidden)), ffn_b1=nrm(next(keys), (1, hidden)),
            ffn_w2=nrm(next(keys), (hidden, hidden)), ffn_b2=nrm(next(keys), (1, hidden)),
        )
        params['blocks'].append(blk)
    return params


def seq2feats(params, cfg, log_seqs, time_matrices, use_pallas=True):
    """Runs the transformer blocks; returns the pre-final-LayerNorm features."""
    B, L = log_seqs.shape
    H = cfg['hidden']
    heads = cfg['heads']
    assert H % heads == 0
    M = B * L
    mxu_dtype = jnp.bfloat16 if cfg.get('mxu_bf16', True) else jnp.float32

    seqs = params['item_emb'][log_seqs] * (H ** 0.5)           # (B, L, H)
    pos_ids = jnp.arange(L)
    abs_pos_K = params['abs_pos_K_emb'][pos_ids]               # (L, H) shared over batch
    abs_pos_V = params['abs_pos_V_emb'][pos_ids]
    ek = params['time_matrix_K_emb'].astype(mxu_dtype)         # (T+1, H) MXU operands
    ev = params['time_matrix_V_emb'].astype(mxu_dtype)

    timeline_mask = (log_seqs == 0)                            # (B, L) bool
    keep = (~timeline_mask).astype(jnp.float32)[:, :, None]    # (B, L, 1)
    pad = timeline_mask.astype(jnp.float32)[:, :, None]        # (B, L, 1)
    seqs = seqs * keep
    tmat = time_matrices.astype(jnp.int32)
    keep_flat = keep.reshape(M, 1)

    for blk in params['blocks']:
        if use_pallas:
            xn, Q, K, V = ln_qkv_p(
                seqs.reshape(M, H), blk['attn_ln_g'], blk['attn_ln_b'],
                blk['Qw'].astype(mxu_dtype), blk['Qb'],
                blk['Kw'].astype(mxu_dtype), blk['Kb'],
                blk['Vw'].astype(mxu_dtype), blk['Vb'])
            mha = attention_p(Q.reshape(B, L, H), K.reshape(B, L, H),
                              V.reshape(B, L, H), abs_pos_K, abs_pos_V,
                              ek, ev, tmat, pad, heads)
            seqs = ffn_block_p(xn, mha.reshape(M, H), keep_flat,
                               blk['fwd_ln_g'], blk['fwd_ln_b'],
                               blk['ffn_w1'].astype(mxu_dtype), blk['ffn_b1'],
                               blk['ffn_w2'].astype(mxu_dtype), blk['ffn_b2']
                               ).reshape(B, L, H)
        else:
            qln = _ln_ref(seqs, blk['attn_ln_g'], blk['attn_ln_b'])
            Q = qln @ blk['Qw'] + blk['Qb']
            K = seqs @ blk['Kw'] + blk['Kb']
            V = seqs @ blk['Vw'] + blk['Vb']
            pK = jnp.broadcast_to(abs_pos_K, (B, L, H))
            pV = jnp.broadcast_to(abs_pos_V, (B, L, H))
            tK = params['time_matrix_K_emb'][tmat]             # (B, L, L, H)
            tV = params['time_matrix_V_emb'][tmat]
            mha = _attn_ref(Q, K, V, pK, pV, tK, tV, timeline_mask, heads)
            s = qln + mha
            x2 = _ln_ref(s, blk['fwd_ln_g'], blk['fwd_ln_b'])
            h = jnp.maximum(x2 @ blk['ffn_w1'] + blk['ffn_b1'], 0.0)
            seqs = (h @ blk['ffn_w2'] + blk['ffn_b2'] + x2) * keep
    return seqs


def tisasrec_forward(params, cfg, log_seqs, time_matrices, pos_seqs, neg_seqs,
                     use_pallas=True):
    seqs = seq2feats(params, cfg, log_seqs, time_matrices, use_pallas)
    B, L, H = seqs.shape
    pos_embs = params['item_emb'][pos_seqs]
    neg_embs = params['item_emb'][neg_seqs]
    if use_pallas:
        pos_row, neg_row = final_logits_p(
            seqs.reshape(B * L, H), params['last_ln_g'], params['last_ln_b'],
            pos_embs.reshape(B * L, H), neg_embs.reshape(B * L, H))
        pos_logits = pos_row.reshape(B, L)
        neg_logits = neg_row.reshape(B, L)
    else:
        log_feats = _ln_ref(seqs, params['last_ln_g'], params['last_ln_b'])
        pos_logits = jnp.sum(log_feats * pos_embs, axis=-1)
        neg_logits = jnp.sum(log_feats * neg_embs, axis=-1)
    return pos_logits, neg_logits


# ----------------------------- main -----------------------------

if __name__ == "__main__":
    B, L, H, heads, blocks = 2, 8, 32, 2, 2
    item_num, time_span = 20, 10

    key = jax.random.PRNGKey(0)
    kp, k1, k2, k3, k4 = jax.random.split(key, 5)
    params = init_params(kp, item_num, time_span, L, H, blocks)

    log_seqs = jax.random.randint(k1, (B, L), 0, item_num + 1)
    log_seqs = log_seqs.at[:, :2].set(0)  # leading padding positions
    time_matrices = jax.random.randint(k2, (B, L, L), 0, time_span + 1)
    pos_seqs = jax.random.randint(k3, (B, L), 1, item_num + 1)
    neg_seqs = jax.random.randint(k4, (B, L), 1, item_num + 1)

    # pure-JAX reference (materialised (B, L, L, H) time tensors, per-head split)
    ref_pos, ref_neg = tisasrec_forward(
        params, dict(hidden=H, heads=heads), log_seqs, time_matrices,
        pos_seqs, neg_seqs, use_pallas=False)

    # Pallas path with f32 MXU operands: tight parity.
    cfg32 = dict(hidden=H, heads=heads, mxu_bf16=False)
    p32, n32 = tisasrec_forward(params, cfg32, log_seqs, time_matrices,
                                pos_seqs, neg_seqs, use_pallas=True)
    jax.block_until_ready((p32, n32))
    assert jnp.allclose(p32, ref_pos, atol=1e-3, rtol=1e-3), "pos_logits mismatch (f32)"
    assert jnp.allclose(n32, ref_neg, atol=1e-3, rtol=1e-3), "neg_logits mismatch (f32)"

    # Pallas path with bf16 MXU operands (recommended on v6e/v7x): looser parity.
    cfg16 = dict(hidden=H, heads=heads, mxu_bf16=True)
    p16, n16 = tisasrec_forward(params, cfg16, log_seqs, time_matrices,
                                pos_seqs, neg_seqs, use_pallas=True)
    jax.block_until_ready((p16, n16))
    assert jnp.allclose(p16, ref_pos, atol=1e-2, rtol=1e-2), "pos_logits mismatch (bf16)"
    assert jnp.allclose(n16, ref_neg, atol=1e-2, rtol=1e-2), "neg_logits mismatch (bf16)"

    print("KERNEL_OK")
</pallas_src>

<mosaic_0001>
module attributes {stable_mosaic.version = 11 : i64} {
  func.func @_ln_qkv_kernel(%arg0: i32, %arg1: memref<16x32xf32, #tpu.memory_space<vmem>>, %arg2: memref<1x32xf32, #tpu.memory_space<vmem>>, %arg3: memref<1x32xf32, #tpu.memory_space<vmem>>, %arg4: memref<32x32xf32, #tpu.memory_space<vmem>>, %arg5: memref<1x32xf32, #tpu.memory_space<vmem>>, %arg6: memref<32x32xf32, #tpu.memory_space<vmem>>, %arg7: memref<1x32xf32, #tpu.memory_space<vmem>>, %arg8: memref<32x32xf32, #tpu.memory_space<vmem>>, %arg9: memref<1x32xf32, #tpu.memory_space<vmem>>, %arg10: memref<16x32xf32, #tpu.memory_space<vmem>>, %arg11: memref<16x32xf32, #tpu.memory_space<vmem>>, %arg12: memref<16x32xf32, #tpu.memory_space<vmem>>, %arg13: memref<16x32xf32, #tpu.memory_space<vmem>>) attributes {dimension_semantics = [#tpu.dimension_semantics<parallel>], iteration_bounds = array<i64: 1>, scalar_prefetch = 0 : i64, scratch_operands = 0 : i64, tpu.core_type = #tpu.core_type<tc>, window_params = [{transform_indices = @transform_0, window_bounds = array<i64: 16, 32>}, {pipeline_mode = #tpu.pipeline_mode<synchronous>, transform_indices = @transform_1, window_bounds = array<i64: 1, 32>}, {pipeline_mode = #tpu.pipeline_mode<synchronous>, transform_indices = @transform_2, window_bounds = array<i64: 1, 32>}, {pipeline_mode = #tpu.pipeline_mode<synchronous>, transform_indices = @transform_3, window_bounds = array<i64: 32, 32>}, {pipeline_mode = #tpu.pipeline_mode<synchronous>, transform_indices = @transform_4, window_bounds = array<i64: 1, 32>}, {pipeline_mode = #tpu.pipeline_mode<synchronous>, transform_indices = @transform_5, window_bounds = array<i64: 32, 32>}, {pipeline_mode = #tpu.pipeline_mode<synchronous>, transform_indices = @transform_6, window_bounds = array<i64: 1, 32>}, {pipeline_mode = #tpu.pipeline_mode<synchronous>, transform_indices = @transform_7, window_bounds = array<i64: 32, 32>}, {pipeline_mode = #tpu.pipeline_mode<synchronous>, transform_indices = @transform_8, window_bounds = array<i64: 1, 32>}, {transform_indices = @transform_9, window_bounds = array<i64: 16, 32>}, {transform_indices = @transform_10, window_bounds = array<i64: 16, 32>}, {transform_indices = @transform_11, window_bounds = array<i64: 16, 32>}, {transform_indices = @transform_12, window_bounds = array<i64: 16, 32>}]} {
    %c0 = arith.constant 0 : index
    %c0_0 = arith.constant 0 : index
    %0 = vector.load %arg1[%c0, %c0_0] : memref<16x32xf32, #tpu.memory_space<vmem>>, vector<16x32xf32>
    %c0_1 = arith.constant 0 : index
    %c0_2 = arith.constant 0 : index
    %1 = vector.load %arg2[%c0_1, %c0_2] : memref<1x32xf32, #tpu.memory_space<vmem>>, vector<1x32xf32>
    %c0_3 = arith.constant 0 : index
    %c0_4 = arith.constant 0 : index
    %2 = vector.load %arg3[%c0_3, %c0_4] : memref<1x32xf32, #tpu.memory_space<vmem>>, vector<1x32xf32>
    %cst = arith.constant dense<0.000000e+00> : vector<16xf32>
    %3 = vector.multi_reduction <add>, %0, %cst [1] : vector<16x32xf32> to vector<16xf32>
    %4 = vector.shape_cast %3 : vector<16xf32> to vector<16x1xf32>
    %cst_5 = arith.constant 3.200000e+01 : f32
    %5 = vector.broadcast %cst_5 : f32 to vector<16x1xf32>
    %6 = arith.divf %4, %5 : vector<16x1xf32>
    %7 = vector.broadcast %6 : vector<16x1xf32> to vector<16x32xf32>
    %8 = arith.subf %0, %7 : vector<16x32xf32>
    %9 = arith.mulf %8, %8 : vector<16x32xf32>
    %cst_6 = arith.constant dense<0.000000e+00> : vector<16xf32>
    %10 = vector.multi_reduction <add>, %9, %cst_6 [1] : vector<16x32xf32> to vector<16xf32>
    %11 = vector.shape_cast %10 : vector<16xf32> to vector<16x1xf32>
    %cst_7 = arith.constant 3.200000e+01 : f32
    %12 = vector.broadcast %cst_7 : f32 to vector<16x1xf32>
    %13 = arith.divf %11, %12 : vector<16x1xf32>
    %14 = vector.broadcast %6 : vector<16x1xf32> to vector<16x32xf32>
    %15 = arith.subf %0, %14 : vector<16x32xf32>
    %cst_8 = arith.constant 9.99999993E-9 : f32
    %16 = vector.broadcast %cst_8 : f32 to vector<16x1xf32>
    %17 = arith.addf %13, %16 : vector<16x1xf32>
    %18 = math.sqrt %17 : vector<16x1xf32>
    %19 = vector.broadcast %18 : vector<16x1xf32> to vector<16x32xf32>
    %20 = arith.divf %15, %19 : vector<16x32xf32>
    %21 = vector.broadcast %1 : vector<1x32xf32> to vector<16x32xf32>
    %22 = arith.mulf %20, %21 : vector<16x32xf32>
    %23 = vector.broadcast %2 : vector<1x32xf32> to vector<16x32xf32>
    %24 = arith.addf %22, %23 : vector<16x32xf32>
    %c0_9 = arith.constant 0 : index
    %c0_10 = arith.constant 0 : index
    %25 = vector.load %arg10[%c0_9, %c0_10] : memref<16x32xf32, #tpu.memory_space<vmem>>, vector<16x32xf32>
    tpu.vector_store %arg10[%c0_9, %c0_10], %24 {strides = array<i32>} : memref<16x32xf32, #tpu.memory_space<vmem>>, vector<16x32xf32>,
    %c0_11 = arith.constant 0 : index
    %c0_12 = arith.constant 0 : index
    %26 = vector.load %arg4[%c0_11, %c0_12] : memref<32x32xf32, #tpu.memory_space<vmem>>, vector<32x32xf32>
    %cst_13 = arith.constant dense<0.000000e+00> : vector<16x32xf32>
    %27 = tpu.matmul %24, %26, %cst_13 {dimension_numbers = #tpu.dot_dimension_numbers<[1], [0], [0], [1], [0, 0, 1, 1], [], []>, precision = #tpu.contract_precision<fp32>} : vector<16x32xf32>, vector<32x32xf32>, vector<16x32xf32> -> vector<16x32xf32>
    %c0_14 = arith.constant 0 : index
    %c0_15 = arith.constant 0 : index
    %28 = vector.load %arg5[%c0_14, %c0_15] : memref<1x32xf32, #tpu.memory_space<vmem>>, vector<1x32xf32>
    %29 = vector.broadcast %28 : vector<1x32xf32> to vector<16x32xf32>
    %30 = arith.addf %27, %29 : vector<16x32xf32>
    %c0_16 = arith.constant 0 : index
    %c0_17 = arith.constant 0 : index
    %31 = vector.load %arg11[%c0_16, %c0_17] : memref<16x32xf32, #tpu.memory_space<vmem>>, vector<16x32xf32>
    tpu.vector_store %arg11[%c0_16, %c0_17], %30 {strides = array<i32>} : memref<16x32xf32, #tpu.memory_space<vmem>>, vector<16x32xf32>,
    %c0_18 = arith.constant 0 : index
    %c0_19 = arith.constant 0 : index
    %32 = vector.load %arg6[%c0_18, %c0_19] : memref<32x32xf32, #tpu.memory_space<vmem>>, vector<32x32xf32>
    %cst_20 = arith.constant dense<0.000000e+00> : vector<16x32xf32>
    %33 = tpu.matmul %0, %32, %cst_20 {dimension_numbers = #tpu.dot_dimension_numbers<[1], [0], [0], [1], [0, 0, 1, 1], [], []>, precision = #tpu.contract_precision<fp32>} : vector<16x32xf32>, vector<32x32xf32>, vector<16x32xf32> -> vector<16x32xf32>
    %c0_21 = arith.constant 0 : index
    %c0_22 = arith.constant 0 : index
    %34 = vector.load %arg7[%c0_21, %c0_22] : memref<1x32xf32, #tpu.memory_space<vmem>>, vector<1x32xf32>
    %35 = vector.broadcast %34 : vector<1x32xf32> to vector<16x32xf32>
    %36 = arith.addf %33, %35 : vector<16x32xf32>
    %c0_23 = arith.constant 0 : index
    %c0_24 = arith.constant 0 : index
    %37 = vector.load %arg12[%c0_23, %c0_24] : memref<16x32xf32, #tpu.memory_space<vmem>>, vector<16x32xf32>
    tpu.vector_store %arg12[%c0_23, %c0_24], %36 {strides = array<i32>} : memref<16x32xf32, #tpu.memory_space<vmem>>, vector<16x32xf32>,
    %c0_25 = arith.constant 0 : index
    %c0_26 = arith.constant 0 : index
    %38 = vector.load %arg8[%c0_25, %c0_26] : memref<32x32xf32, #tpu.memory_space<vmem>>, vector<32x32xf32>
    %cst_27 = arith.constant dense<0.000000e+00> : vector<16x32xf32>
    %39 = tpu.matmul %0, %38, %cst_27 {dimension_numbers = #tpu.dot_dimension_numbers<[1], [0], [0], [1], [0, 0, 1, 1], [], []>, precision = #tpu.contract_precision<fp32>} : vector<16x32xf32>, vector<32x32xf32>, vector<16x32xf32> -> vector<16x32xf32>
    %c0_28 = arith.constant 0 : index
    %c0_29 = arith.constant 0 : index
    %40 = vector.load %arg9[%c0_28, %c0_29] : memref<1x32xf32, #tpu.memory_space<vmem>>, vector<1x32xf32>
    %41 = vector.broadcast %40 : vector<1x32xf32> to vector<16x32xf32>
    %42 = arith.addf %39, %41 : vector<16x32xf32>
    %c0_30 = arith.constant 0 : index
    %c0_31 = arith.constant 0 : index
    %43 = vector.load %arg13[%c0_30, %c0_31] : memref<16x32xf32, #tpu.memory_space<vmem>>, vector<16x32xf32>
    tpu.vector_store %arg13[%c0_30, %c0_31], %42 {strides = array<i32>} : memref<16x32xf32, #tpu.memory_space<vmem>>, vector<16x32xf32>,
    return
  }
  func.func @transform_0(%arg0: i32) -> (i32, i32) {
    %c0_i32 = arith.constant 0 : i32
    %c0_i32_0 = arith.constant 0 : i32
    return %arg0, %c0_i32 : i32, i32
  }
  func.func @transform_1(%arg0: i32) -> (i32, i32) {
    %c0_i32 = arith.constant 0 : i32
    %c0_i32_0 = arith.constant 0 : i32
    %c0_i32_1 = arith.constant 0 : i32
    return %c0_i32, %c0_i32_0 : i32, i32
  }
  func.func @transform_2(%arg0: i32) -> (i32, i32) {
    %c0_i32 = arith.constant 0 : i32
    %c0_i32_0 = arith.constant 0 : i32
    %c0_i32_1 = arith.constant 0 : i32
    return %c0_i32, %c0_i32_0 : i32, i32
  }
  func.func @transform_3(%arg0: i32) -> (i32, i32) {
    %c0_i32 = arith.constant 0 : i32
    %c0_i32_0 = arith.constant 0 : i32
    %c0_i32_1 = arith.constant 0 : i32
    return %c0_i32, %c0_i32_0 : i32, i32
  }
  func.func @transform_4(%arg0: i32) -> (i32, i32) {
    %c0_i32 = arith.constant 0 : i32
    %c0_i32_0 = arith.constant 0 : i32
    %c0_i32_1 = arith.constant 0 : i32
    return %c0_i32, %c0_i32_0 : i32, i32
  }
  func.func @transform_5(%arg0: i32) -> (i32, i32) {
    %c0_i32 = arith.constant 0 : i32
    %c0_i32_0 = arith.constant 0 : i32
    %c0_i32_1 = arith.constant 0 : i32
    return %c0_i32, %c0_i32_0 : i32, i32
  }
  func.func @transform_6(%arg0: i32) -> (i32, i32) {
    %c0_i32 = arith.constant 0 : i32
    %c0_i32_0 = arith.constant 0 : i32
    %c0_i32_1 = arith.constant 0 : i32
    return %c0_i32, %c0_i32_0 : i32, i32
  }
  func.func @transform_7(%arg0: i32) -> (i32, i32) {
    %c0_i32 = arith.constant 0 : i32
    %c0_i32_0 = arith.constant 0 : i32
    %c0_i32_1 = arith.constant 0 : i32
    return %c0_i32, %c0_i32_0 : i32, i32
  }
  func.func @transform_8(%arg0: i32) -> (i32, i32) {
    %c0_i32 = arith.constant 0 : i32
    %c0_i32_0 = arith.constant 0 : i32
    %c0_i32_1 = arith.constant 0 : i32
    return %c0_i32, %c0_i32_0 : i32, i32
  }
  func.func @transform_9(%arg0: i32) -> (i32, i32) {
    %c0_i32 = arith.constant 0 : i32
    %c0_i32_0 = arith.constant 0 : i32
    return %arg0, %c0_i32 : i32, i32
  }
  func.func @transform_10(%arg0: i32) -> (i32, i32) {
    %c0_i32 = arith.constant 0 : i32
    %c0_i32_0 = arith.constant 0 : i32
    return %arg0, %c0_i32 : i32, i32
  }
  func.func @transform_11(%arg0: i32) -> (i32, i32) {
    %c0_i32 = arith.constant 0 : i32
    %c0_i32_0 = arith.constant 0 : i32
    return %arg0, %c0_i32 : i32, i32
  }
  func.func @transform_12(%arg0: i32) -> (i32, i32) {
    %c0_i32 = arith.constant 0 : i32
    %c0_i32_0 = arith.constant 0 : i32
    return %arg0, %c0_i32 : i32, i32
  }
}

</mosaic_0001>

<bundles_post_ra>
// kernel: tpu_custom_call.1
= control target key start
LH: loop header
LB: loop body
LE: loop exit
PB: predicated region body
PF: predicated region fallthrough
CT: control target
= control target key end

     0   :  { %18 = vsyncpa [#allocation3], 0  ;;  %s1567_s0 = inlined_call_operand.hbm [shape: f32[16,32], index: 0, kind: input, shape index: {}]   ;;  %s1568_s1 = inlined_call_operand.hbm [shape: f32[1,32], index: 1, kind: input, shape index: {}]   ;;  %s1569_s2 = inlined_call_operand.vmem [shape: f32[1,32], index: 2, kind: input, shape index: {}]   ;;  %s1570_s3 = inlined_call_operand.hbm [shape: f32[32,32], index: 3, kind: input, shape index: {}]   ;;  %s1571_s4 = inlined_call_operand.vmem [shape: f32[1,32], index: 4, kind: input, shape index: {}]   ;;  %s1572_s5 = inlined_call_operand.hbm [shape: f32[32,32], index: 5, kind: input, shape index: {}]   ;;  %s1573_s6 = inlined_call_operand.vmem [shape: f32[1,32], index: 6, kind: input, shape index: {}]   ;;  %s1574_s7 = inlined_call_operand.hbm [shape: f32[32,32], index: 7, kind: input, shape index: {}]   ;;  %s1575_s8 = inlined_call_operand.vmem [shape: f32[1,32], index: 8, kind: input, shape index: {}]   ;;  %s1576_s9 = inlined_call_operand.hbm [shape: f32[16,32], index: 9, kind: output, shape index: {0}]   ;;  %s1577_s10 = inlined_call_operand.hbm [shape: f32[16,32], index: 10, kind: output, shape index: {1}]   ;;  %s1578_s11 = inlined_call_operand.hbm [shape: f32[16,32], index: 11, kind: output, shape index: {2}]   ;;  %s1579_s12 = inlined_call_operand.hbm [shape: f32[16,32], index: 12, kind: output, shape index: {3}]  }
   0x1   :  { %19 = vsyncpa [#allocation6], 0 }
   0x2   :  { %20 = vsyncpa [#allocation9], 0 }
   0x3   :  { %21 = vsyncpa [#allocation4], 0 }
   0x4   :  { %22 = vsyncpa [#allocation13], 0  ;;  %s42_s23 = sshll.u32 %s1568_s1, 4  ;;  %s43_s23 = int_to_ptr.hbm [resolvable:$true] %s42_s23 }
   0x5   :  { %23 = vsyncpa [#allocation16], 0  ;;  %s1242_s24 = smov [#allocation5]   ;;  %s69_s28 = sshll.u32 %s1572_s5, 4  ;;  %s70_s28 = int_to_ptr.hbm [resolvable:$true] %s69_s28 }
   0x6   :  { %s44_s25 = sshll.u32 %s1242_s24, 4  ;;  %s1243_s29 = smov [#allocation8]   ;;  %s45_s25 = int_to_ptr.vmem [resolvable:$true] %s44_s25 }
   0x7   :  { %47 = dma.hbm_to_vmem [thread:$0]  %s43_s23, 16, %s45_s25, [#allocation6]  }
   0x8   :  { %s71_s30 = sshll.u32 %s1243_s29, 4  ;;  %s28_s15 = sshll.u32 %s1567_s0, 4  ;;  %s72_s30 = int_to_ptr.vmem [resolvable:$true] %s71_s30  ;;  %s29_s15 = int_to_ptr.hbm [resolvable:$true] %s28_s15 }
   0x9   :  { %s1244_s1 = smov 128   ;;  %s1245_s16 = smov 8  }
   0xa   :  { %77 = dma.hbm_to_vmem [thread:$0]  %s70_s28, 512, %s72_s30, [#allocation9], %s1244_s1, %s1244_s1, %s1245_s16  }
   0xb   :  { %s54_s19 = sshll.u32 %s1570_s3, 4  ;;  %s1246_s5 = smov [#allocation2]   ;;  %s55_s19 = int_to_ptr.hbm [resolvable:$true] %s54_s19 }
   0xc   :  { %s30_s20 = sshll.u32 %s1246_s5, 4  ;;  %s1247_s0 = smov [#allocation7]   ;;  %s31_s20 = int_to_ptr.vmem [resolvable:$true] %s30_s20 }
   0xd   :  { %36 = dma.hbm_to_vmem [thread:$0]  %s29_s15, 256, %s31_s20, [#allocation3], %s1244_s1, %s1244_s1, %s1245_s16  }
   0xe   :  { %s56_s21 = sshll.u32 %s1247_s0, 4  ;;  %s84_s24 = sshll.u32 %s1574_s7, 4  ;;  %s57_s21 = int_to_ptr.vmem [resolvable:$true] %s56_s21  ;;  %s85_s24 = int_to_ptr.hbm [resolvable:$true] %s84_s24 }
   0xf   :  { %62 = dma.hbm_to_vmem [thread:$0]  %s55_s19, 512, %s57_s21, [#allocation6], %s1244_s1, %s1244_s1, %s1245_s16  }
  0x10   :  { %s1248_s3 = smov [#allocation10]  }
  0x11   :  { %s86_s25 = sshll.u32 %s1248_s3, 4  ;;  %s87_s25 = int_to_ptr.vmem [resolvable:$true] %s86_s25 }
  0x12   :  { %92 = dma.hbm_to_vmem [thread:$0]  %s85_s24, 512, %s87_s25, [#allocation9], %s1244_s1, %s1244_s1, %s1245_s16  }
  0x13   :  { %1230 = dma.done.wait [#allocation3], 256  }
  0x14   :  { %1231 = vsyncadd [#allocation3], 4294967040 }
  0x15   :  { %1232 = dma.done.wait [#allocation6], 528  }
  0x16   :  { %1233 = vsyncadd [#allocation6], 4294966768 }
  0x17   :  { %1234 = dma.done.wait [#allocation9], 1024  }
  0x18   :  { %1235 = vsyncadd [#allocation9], 4294966272  ;;  %vm119_vm0 = vcmask 261120   ;;  %v1346_v0 = vld [vmem:[#allocation2 + $0x8] sm:$0xff]  ;;  %v1350_v2 = vld [vmem:[#allocation2] sm:$0xff]  ;;  %v1249_v4 = vmov 32.0  }
  0x19   :  { %v123_v1 = vsel %vm119_vm0, %v1346_v0, 0.0  ;;  %v120_v3 = vsel %vm119_vm0, %v1350_v2, 0.0  ;;  %1004 = vrcp.f32 %v1249_v4  ;;  %v218_v22 = vld [vmem:[#allocation7 + $0x18] sm:$0xff]  ;;  %v217_v23 = vld [vmem:[#allocation7 + $0x10] sm:$0xff]  ;;  %v216_v24 = vld [vmem:[#allocation7 + $0x8] sm:$0xff]  ;;  %s911_s28 = sshll.u32 %s1576_s9, 4  ;;  %s912_s28 = int_to_ptr.hbm [resolvable:$true] %s911_s28 }
  0x1a   :  { %124 = vadd.xlane.f32.xlu0 %v123_v1  ;;  %v241_v26 = vand.u32 4294901760, %v218_v22  ;;  %v243_v27 = vand.u32 4294901760, %v217_v23  ;;  %v1366_v28 = vand.u32 4294901760, %v216_v24  ;;  %v215_v29 = vld [vmem:[#allocation7] sm:$0xff]  ;;  %s1250_s29 = smov [#allocation11]   ;;  %s924_s18 = sshll.u32 %s1577_s10, 4  ;;  %s925_s18 = int_to_ptr.hbm [resolvable:$true] %s924_s18 }
  0x1b   :  { %v1368_v30 = vand.u32 4294901760, %v215_v29  ;;  %s909_s30 = sshll.u32 %s1250_s29, 4  ;;  %s1252_s20 = smov [#allocation14]   ;;  %s910_s30 = int_to_ptr.vmem [resolvable:$true] %s909_s30 }
  0x1c   :  { %v279_v32 = vsub.f32 %v218_v22, %v241_v26  ;;  %v285_v33 = vsub.f32 %v217_v23, %v243_v27  ;;  %v291_v34 = vsub.f32 %v216_v24, %v1366_v28  ;;  %979 = vmatpush.msra.mxu2 %v241_v26  ;;  %242 = vmatpush.msra.mxu0 %v241_v26  ;;  %s935_s0 = sshll.u32 %s1252_s20, 4  ;;  %s937_s23 = sshll.u32 %s1578_s11, 4  ;;  %s936_s0 = int_to_ptr.vmem [resolvable:$true] %s935_s0  ;;  %s938_s23 = int_to_ptr.hbm [resolvable:$true] %s937_s23 }
  0x1d   :  { %v297_v35 = vsub.f32 %v215_v29, %v1368_v30  ;;  %s950_s25 = sshll.u32 %s1579_s12, 4  ;;  %s951_s25 = int_to_ptr.hbm [resolvable:$true] %s950_s25 }
  0x1e   :  { %980 = vmatpush.msra.mxu2 %v243_v27  ;;  %244 = vmatpush.msra.mxu0 %v243_v27  ;;  %v280_v36 = vand.u32 4294901760, %v279_v32  ;;  %v286_v37 = vand.u32 4294901760, %v285_v33  ;;  %v292_v38 = vand.u32 4294901760, %v291_v34 }
  0x1f   :  { %v1005_v5 = vpop.eup %1004  ;;  %v298_v39 = vand.u32 4294901760, %v297_v35 }
  0x20   :  { %v127_v6 = vmul.f32 32.0, %v1005_v5  ;;  %vm131_vm1 = vweird.f32 %v1005_v5  ;;  %981 = vmatpush.msra.mxu2 %v1366_v28  ;;  %246 = vmatpush.msra.mxu0 %v1366_v28  ;;  %v281_v41 = vsub.f32 %v279_v32, %v280_v36  ;;  %v287_v42 = vsub.f32 %v285_v33, %v286_v37 }
  0x21   :  { %v293_v43 = vsub.f32 %v291_v34, %v292_v38  ;;  %v299_v47 = vsub.f32 %v297_v35, %v298_v39 }
  0x22   :  { %121 = vadd.xlane.f32.xlu0 %v120_v3  ;;  %v128_v7 = vsub.f32 1.0, %v127_v6  ;;  %982 = vmatpush.msra.mxu2 %v1368_v30  ;;  %v282_v45 = vand.u32 4294901760, %v281_v41  ;;  %v288_v46 = vand.u32 4294901760, %v287_v42 }
  0x23   :  { %248 = vmatpush.msra.mxu0 %v1368_v30  ;;  %v294_v51 = vand.u32 4294901760, %v293_v43  ;;  %v300_v53 = vand.u32 4294901760, %v299_v47 }
  0x24   :  { %v129_v8 = vmul.f32 %v1005_v5, %v128_v7  ;;  %325 = vmatpush.msrb.mxu2 %v279_v32  ;;  %983 = vmatpush.msra.mxu3 %v282_v45 }
  0x25   :  { %394 = vmatpush.msrb.mxu0 %v280_v36  ;;  %283 = vmatpush.msra.mxu1 %v282_v45 }
  0x26   :  { %v130_v9 = vadd.f32 %v1005_v5, %v129_v8  ;;  %328 = vmatpush.msrb.mxu2 %v285_v33  ;;  %984 = vmatpush.msra.mxu3 %v288_v46 }
  0x27   :  { %398 = vmatpush.msrb.mxu0 %v286_v37  ;;  %289 = vmatpush.msra.mxu1 %v288_v46  ;;  %v447_v37 = vld [vmem:[#allocation8] sm:$0xff] }
  0x28   :  { %v132_v10 = vsel %vm131_vm1, %v1005_v5, %v130_v9  ;;  %331 = vmatpush.msrb.mxu2 %v291_v34  ;;  %985 = vmatpush.msra.mxu3 %v294_v51  ;;  %v1000_v34 = vld [vmem:[%s1569_s2] ss:$0 sm:$0xff]  ;;  %v1410_v41 = vand.u32 4294901760, %v447_v37 }
  0x29   :  { %402 = vmatpush.msrb.mxu0 %v292_v38  ;;  %295 = vmatpush.msra.mxu1 %v294_v51 }
  0x2a   :  { %334 = vmatpush.msrb.mxu2 %v297_v35  ;;  %986 = vmatpush.msra.mxu3 %v300_v53  ;;  %v1417_v45 = vsub.f32 %v447_v37, %v1410_v41 }
  0x2b   :  { %406 = vmatpush.msrb.mxu0 %v298_v39  ;;  %301 = vmatpush.msra.mxu1 %v300_v53 }
  0x2c   :  { %359 = vmatpush.msrb.mxu3 %v241_v26 }
  0x2d   :  { %429 = vmatpush.msrb.mxu1 %v241_v26  ;;  %v999_v26 = vld [vmem:[#allocation5] ss:$0 sm:$0xff] }
  0x2e   :  { %361 = vmatpush.msrb.mxu3 %v243_v27 }
  0x2f   :  { %431 = vmatpush.msrb.mxu1 %v243_v27 }
  0x30   :  { %363 = vmatpush.msrb.mxu3 %v1366_v28 }
  0x31   :  { %433 = vmatpush.msrb.mxu1 %v1366_v28  ;;  %v448_v28 = vld [vmem:[#allocation8 + $0x8] sm:$0xff] }
  0x32   :  { %365 = vmatpush.msrb.mxu3 %v1368_v30  ;;  %v1400_v32 = vand.u32 4294901760, %v448_v28 }
  0x33   :  { %435 = vmatpush.msrb.mxu1 %v1368_v30 }
  0x8d   :  { %v125_v11 = vpop.xlane.xlu0 %124 }
  0x8e   :  { %v134_v12 = vmul.f32 %v132_v10, %v125_v11 }
  0x90   :  { %v1355_v13 = vsub.f32 %v1346_v0, %v134_v12 }
  0x92   :  { %v138_v14 = vmul.f32 %v1355_v13, %v1355_v13 }
  0x94   :  { %v142_v15 = vsel %vm119_vm0, %v138_v14, 0.0 }
  0x95   :  { %143 = vadd.xlane.f32.xlu1 %v142_v15  ;;  %v122_v16 = vpop.xlane.xlu0 %121 }
  0x96   :  { %v133_v17 = vmul.f32 %v132_v10, %v122_v16  ;;  %v450_v16 = vld [vmem:[#allocation8 + $0x18] sm:$0xff] }
  0x98   :  { %v1361_v18 = vsub.f32 %v1350_v2, %v133_v17  ;;  %v1389_v17 = vand.u32 4294901760, %v450_v16 }
  0x9a   :  { %v137_v19 = vmul.f32 %v1361_v18, %v1361_v18  ;;  %v1392_v23 = vsub.f32 %v450_v16, %v1389_v17 }
  0x9c   :  { %v139_v20 = vsel %vm119_vm0, %v137_v19, 0.0  ;;  %v512_v30 = vand.u32 4294901760, %v1392_v23 }
  0x9d   :  { %140 = vadd.xlane.f32.xlu1 %v139_v20  ;;  %v449_v20 = vld [vmem:[#allocation8 + $0x10] sm:$0xff] }
  0x9e   :  { %v1394_v24 = vand.u32 4294901760, %v449_v20 }
 0x108   :  { %v144_v21 = vpop.xlane.xlu1 %143 }
 0x109   :  { %v146_v25 = vmul.f32 %v144_v21, %v132_v10 }
 0x10b   :  { %v1370_v31 = vadd.f32 1e-08, %v146_v25 }
 0x10d   :  { %1006 = vrsqrt.f32 %v1370_v31  ;;  %vm168_vm2 = vcmp.eq.f32.partialorder %v1370_v31, inf  ;;  %v171_v61 = vand.u32 2147483648, %v1370_v31  ;;  %vm170_vm3 = vcmp.eq.f32.partialorder %v1370_v31, 0.0 }
 0x110   :  { %v141_v40 = vpop.xlane.xlu1 %140 }
 0x111   :  { %v145_v44 = vmul.f32 %v141_v40, %v132_v10  ;;  %v1408_v40 = vsub.f32 %v448_v28, %v1400_v32  ;;  %v679_v28 = vld [vmem:[#allocation10] sm:$0xff] }
 0x113   :  { %v1007_v48 = vpop.eup %1006  ;;  %v147_v49 = vadd.f32 1e-08, %v145_v44  ;;  %v524_v44 = vand.u32 4294901760, %v1408_v40 }
 0x114   :  { %v162_v50 = vmul.f32 %v1007_v48, %v1370_v31 }
 0x115   :  { %1008 = vrsqrt.f32 %v147_v49  ;;  %vm156_vm4 = vcmp.eq.f32.partialorder %v147_v49, inf  ;;  %v159_v6 = vand.u32 2147483648, %v147_v49  ;;  %vm158_vm5 = vcmp.eq.f32.partialorder %v147_v49, 0.0 }
 0x116   :  { %v163_v52 = vmul.f32 %v1007_v48, %v162_v50  ;;  %v530_v50 = vand.u32 4294901760, %v1417_v45 }
 0x118   :  { %v164_v54 = vmul.f32 0.5, %v163_v52 }
 0x11a   :  { %v165_v55 = vsub.f32 1.5, %v164_v54  ;;  %v525_v54 = vsub.f32 %v1408_v40, %v524_v44 }
 0x11b   :  { %v1009_v56 = vpop.eup %1008 }
 0x11c   :  { %v166_v57 = vmul.f32 %v1007_v48, %v165_v55  ;;  %v150_v58 = vmul.f32 %v1009_v56, %v147_v49 }
 0x11e   :  { %v167_v59 = vmul.f32 %v166_v57, %v1370_v31  ;;  %v151_v60 = vmul.f32 %v1009_v56, %v150_v58 }
 0x120   :  { %v169_v62 = vsel %vm168_vm2, %v1370_v31, %v167_v59  ;;  %v152_v63 = vmul.f32 0.5, %v151_v60  ;;  %v1398_v31 = vsub.f32 %v449_v20, %v1394_v24  ;;  %v531_v59 = vsub.f32 %v1417_v45, %v530_v50 }
 0x121   :  { %v172_v1 = vsel %vm170_vm3, %v171_v61, %v169_v62  ;;  %v526_v62 = vand.u32 4294901760, %v525_v54 }
 0x122   :  { %v153_v3 = vsub.f32 1.5, %v152_v63  ;;  %1010 = vrcp.f32 %v172_v1  ;;  %v199_v12 = vand.u32 2147483648, %v172_v1  ;;  %v197_v15 = vand.u32 2147483647, %v172_v1 }
 0x123   :  { %vm193_vm7 = vweird.f32 %v172_v1  ;;  %v518_v39 = vand.u32 4294901760, %v1398_v31 }
 0x124   :  { %v154_v4 = vmul.f32 %v1009_v56, %v153_v3  ;;  %v200_v22 = vor.u32 1.1754944e-38, %v199_v12  ;;  %vm198_vm9 = vcmp.eq.f32.partialorder %v197_v15, 8.507059e+37  ;;  %v532_v3 = vand.u32 4294901760, %v531_v59 }
 0x125   :  { %v519_v48 = vsub.f32 %v1398_v31, %v518_v39 }
 0x126   :  { %v155_v5 = vmul.f32 %v154_v4, %v147_v49 }
 0x127   :  { %v520_v58 = vand.u32 4294901760, %v519_v48 }
 0x128   :  { %v1011_v7 = vpop.eup %1010  ;;  %v157_v8 = vsel %vm156_vm4, %v147_v49, %v155_v5 }
 0x129   :  { %v189_v9 = vmul.f32 %v1011_v7, %v172_v1  ;;  %v160_v10 = vsel %vm158_vm5, %v159_v6, %v157_v8  ;;  %vm194_vm6 = vweird.f32 %v1011_v7  ;;  %v682_v8 = vld [vmem:[#allocation10 + $0x18] sm:$0xff] }
 0x12a   :  { %1012 = vrcp.f32 %v160_v10  ;;  %vm195_vm8 = vmor %vm193_vm7, %vm194_vm6  ;;  %v182_v36 = vand.u32 2147483647, %v160_v10  ;;  %v184_v38 = vand.u32 2147483648, %v160_v10  ;;  %vm178_vm11 = vweird.f32 %v160_v10 }
 0x12b   :  { %v190_v11 = vsub.f32 1.0, %v189_v9  ;;  %v456_v9 = vsel %vm119_vm0, %v1350_v2, 0 }
 0x12c   :  { %vm183_vm13 = vcmp.eq.f32.partialorder %v182_v36, 8.507059e+37  ;;  %v185_v49 = vor.u32 1.1754944e-38, %v184_v38  ;;  %v1453_v15 = vand.u32 4294901760, %v456_v9 }
 0x12d   :  { %v191_v14 = vmul.f32 %v1011_v7, %v190_v11  ;;  %v681_v11 = vld [vmem:[#allocation10 + $0x10] sm:$0xff] }
 0x12e   :  { %v1455_v2 = vand.u32 4294901760, %v681_v11 }
 0x12f   :  { %v192_v19 = vadd.f32 %v1011_v7, %v191_v14 }
 0x130   :  { %v1013_v21 = vpop.eup %1012 }
 0x131   :  { %v196_v25 = vsel %vm195_vm8, %v1011_v7, %v192_v19  ;;  %v174_v27 = vmul.f32 %v1013_v21, %v160_v10  ;;  %vm179_vm10 = vweird.f32 %v1013_v21  ;;  %v1446_v10 = vand.u32 4294901760, %v682_v8 }
 0x132   :  { %v201_v29 = vsel %vm198_vm9, %v200_v22, %v196_v25  ;;  %vm180_vm12 = vmor %vm178_vm11, %vm179_vm10  ;;  %v680_v22 = vld [vmem:[#allocation10 + $0x8] sm:$0xff]  ;;  %v459_v25 = vsel %vm119_vm0, %v1346_v0, 0 }
 0x133   :  { %v202_v33 = vmul.f32 %v201_v29, %v1355_v13  ;;  %v175_v35 = vsub.f32 1.0, %v174_v27  ;;  %v513_v13 = vsub.f32 %v1392_v23, %v512_v30  ;;  %v1451_v14 = vsub.f32 %v682_v8, %v1446_v10 }
 0x134   :  { %v703_v27 = vand.u32 4294901760, %v680_v22  ;;  %v705_v29 = vand.u32 4294901760, %v679_v28 }
 0x135   :  { %v207_v42 = vmul.f32 %v999_v26, %v202_v33  ;;  %v176_v43 = vmul.f32 %v1013_v21, %v175_v35  ;;  %v514_v53 = vand.u32 4294901760, %v513_v13  ;;  %v738_v19 = vand.u32 4294901760, %v1451_v14 }
 0x136   :  { %v749_v33 = vsub.f32 %v680_v22, %v703_v27  ;;  %v755_v36 = vsub.f32 %v679_v28, %v705_v29 }
 0x137   :  { %v212_v46 = vadd.f32 %v1000_v34, %v207_v42  ;;  %v177_v47 = vadd.f32 %v1013_v21, %v176_v43 }
 0x138   :  { %v756_v38 = vand.u32 4294901760, %v755_v36 }
 0x139   :  { %v227_v51 = vsel %vm119_vm0, %v212_v46, 0  ;;  %214 = vst.msk [vmem:[#allocation11 + $0x8] sm:$0xff] %vm119_vm0, %v212_v46  ;;  %v181_v52 = vsel %vm180_vm12, %v1013_v21, %v177_v47  ;;  %v739_v21 = vsub.f32 %v1451_v14, %v738_v19 }
 0x13a   :  { %v1428_v55 = vand.u32 4294901760, %v227_v51  ;;  %v186_v56 = vsel %vm183_vm13, %v185_v49, %v181_v52  ;;  %v757_v43 = vsub.f32 %v755_v36, %v756_v38  ;;  %v1001_v49 = vld [vmem:[%s1571_s4] ss:$0 sm:$0xff]  ;;  %s1251_s4 = smov [#allocation12]  }
 0x13b   :  { %v187_v57 = vmul.f32 %v186_v56, %v1361_v18  ;;  %s922_s9 = sshll.u32 %s1251_s4, 4  ;;  %s923_s9 = int_to_ptr.vmem [resolvable:$true] %s922_s9 }
 0x13c   :  { %307 = vmatmul.f32.vlgmr.msra.gmra.mxu3 %v1428_v55  ;;  %v1436_v60 = vsub.f32 %v227_v51, %v1428_v55 }
 0x13d   :  { %v206_v61 = vmul.f32 %v999_v26, %v187_v57  ;;  %515 = vmatpush.msra.mxu3 %v514_v53  ;;  %v1469_v26 = vsub.f32 %v456_v9, %v1453_v15 }
 0x13e   :  { %v259_v63 = vand.u32 4294901760, %v1436_v60 }
 0x13f   :  { %v211_v1 = vadd.f32 %v1000_v34, %v206_v61  ;;  %521 = vmatpush.msra.mxu3 %v520_v58  ;;  %v1479_v34 = vand.u32 4294901760, %v459_v25  ;;  %v1484_v35 = vand.u32 4294901760, %v1469_v26 }
 0x140   :  { %v260_v18 = vsub.f32 %v1436_v60, %v259_v63 }
 0x141   :  { %v224_v4 = vsel %vm119_vm0, %v211_v1, 0  ;;  %213 = vst.msk [vmem:[#allocation11] sm:$0xff] %vm119_vm0, %v211_v1  ;;  %527 = vmatpush.msra.mxu3 %v526_v62 }
 0x142   :  { %v261_v5 = vand.u32 4294901760, %v260_v18  ;;  %v249_v6 = vand.u32 4294901760, %v224_v4  ;;  %917 = dma.vmem_to_hbm [thread:$0]  %s910_s30, 256, %s912_s28, [#allocation4], %s1244_s1, %s1244_s1, %s1245_s16  }
 0x143   :  { %533 = vmatpush.msra.mxu3 %v532_v3 }
 0x144   :  { %262 = vmatmul.f32.vlgmr.msra.gmra.mxu2 %v261_v5  ;;  %303 = vmatmul.f32.vlgmr.msra.gmra.mxu1 %v249_v6  ;;  %v250_v7 = vsub.f32 %v224_v4, %v249_v6 }
 0x145   :  { %474 = vmatpush.msra.mxu2 %v1389_v17  ;;  %591 = vmatpush.msra.mxu1 %v1389_v17 }
 0x146   :  { %v251_v12 = vand.u32 4294901760, %v250_v7 }
 0x147   :  { %476 = vmatpush.msra.mxu2 %v1394_v24  ;;  %593 = vmatpush.msra.mxu1 %v1394_v24 }
 0x148   :  { %369 = vmatmul.f32.vlgmr.msrb.gmra.mxu3 %v251_v12  ;;  %v252_v16 = vsub.f32 %v250_v7, %v251_v12 }
 0x149   :  { %478 = vmatpush.msra.mxu2 %v1400_v32  ;;  %661 = vmatpush.msrb.mxu3 %v1389_v17  ;;  %v1472_v17 = vsub.f32 %v681_v11, %v1455_v2 }
 0x14a   :  { %v253_v20 = vand.u32 4294901760, %v252_v16  ;;  %595 = vmatpush.msra.mxu1 %v1400_v32 }
 0x14b   :  { %480 = vmatpush.msra.mxu2 %v1410_v41  ;;  %663 = vmatpush.msrb.mxu3 %v1394_v24  ;;  %v740_v24 = vand.u32 4294901760, %v739_v21  ;;  %v744_v0 = vand.u32 4294901760, %v1472_v17 }
 0x14c   :  { %254 = vmatmul.f32.vlgmr.msra.gmra.mxu0 %v253_v20  ;;  %337 = vmatmul.f32.vlgmr.msrb.gmra.mxu2 %v250_v7 }
 0x14d   :  { %437 = vmatmul.f32.vlgmr.msrb.gmra.mxu1 %v249_v6  ;;  %557 = vmatpush.msra.mxu0 %v1392_v23  ;;  %v745_v23 = vsub.f32 %v1472_v17, %v744_v0 }
 0x14e   :  { %626 = vmatpush.msrb.mxu2 %v512_v30  ;;  %597 = vmatpush.msra.mxu1 %v1410_v41  ;;  %v750_v30 = vand.u32 4294901760, %v749_v33 }
 0x14f   :  { %560 = vmatpush.msra.mxu0 %v1398_v31  ;;  %665 = vmatpush.msrb.mxu3 %v1400_v32  ;;  %v746_v32 = vand.u32 4294901760, %v745_v23  ;;  %v490_v31 = vsub.f32 %v459_v25, %v1479_v34  ;;  %v1003_v23 = vld [vmem:[%s1575_s8] ss:$0 sm:$0xff]  ;;  %s1253_s8 = smov [#allocation15]  }
 0x150   :  { %375 = vmatmul.f32.gmra.mxu3 %v259_v63  ;;  %630 = vmatpush.msrb.mxu2 %v518_v39  ;;  %v751_v37 = vsub.f32 %v749_v33, %v750_v30  ;;  %v484_v39 = vsub.f32 %v1469_v26, %v1484_v35  ;;  %s948_s11 = sshll.u32 %s1253_s8, 4  ;;  %s949_s11 = int_to_ptr.vmem [resolvable:$true] %s948_s11 }
 0x151   :  { %563 = vmatpush.msra.mxu0 %v1408_v40  ;;  %741 = vmatpush.msrb.mxu1 %v740_v24  ;;  %v758_v40 = vand.u32 4294901760, %v757_v43  ;;  %v491_v13 = vand.u32 4294901760, %v490_v31 }
 0x152   :  { %634 = vmatpush.msrb.mxu2 %v524_v44  ;;  %667 = vmatpush.msrb.mxu3 %v1410_v41  ;;  %v752_v42 = vand.u32 4294901760, %v751_v37  ;;  %v485_v41 = vand.u32 4294901760, %v484_v39 }
 0x153   :  { %566 = vmatpush.msra.mxu0 %v1417_v45  ;;  %747 = vmatpush.msrb.mxu1 %v746_v32  ;;  %v492_v44 = vsub.f32 %v490_v31, %v491_v13 }
 0x154   :  { %342 = vmatmul.f32.gmra.mxu2 %v1436_v60  ;;  %408 = vmatmul.f32.vlgmr.msrb.gmra.mxu0 %v249_v6 }
 0x155   :  { %441 = vmatmul.f32.gmra.mxu1 %v1428_v55  ;;  %700 = vmatpush.msrb.mxu0 %v1446_v10  ;;  %v493_v45 = vand.u32 4294901760, %v492_v44 }
 0x156   :  { %638 = vmatpush.msrb.mxu2 %v530_v50  ;;  %753 = vmatpush.msrb.mxu1 %v752_v42 }
 0x157   :  { %702 = vmatpush.msrb.mxu0 %v1455_v2 }
 0x158   :  { %535 = vmatmul.f32.vlgmr.msra.gmra.mxu3 %v1453_v15  ;;  %759 = vmatpush.msrb.mxu1 %v758_v40 }
 0x159   :  { %704 = vmatpush.msrb.mxu0 %v703_v27  ;;  %817 = vmatpush.msra.mxu3 %v1446_v10 }
 0x15b   :  { %706 = vmatpush.msrb.mxu0 %v705_v29  ;;  %819 = vmatpush.msra.mxu3 %v1455_v2 }
 0x15c   :  { %412 = vmatmul.f32.gmra.mxu0 %v1428_v55  ;;  %486 = vmatmul.f32.vlgmr.msra.gmra.mxu2 %v485_v41 }
 0x15d   :  { %601 = vmatmul.f32.vlgmr.msra.gmra.mxu1 %v1484_v35  ;;  %783 = vmatpush.msra.mxu2 %v1451_v14 }
 0x15e   :  { %821 = vmatpush.msra.mxu3 %v703_v27  ;;  %887 = vmatpush.msra.mxu1 %v1446_v10  ;;  %v1002_v10 = vld [vmem:[%s1573_s6] ss:$0 sm:$0xff] }
 0x15f   :  { %786 = vmatpush.msra.mxu2 %v1472_v17 }
 0x160   :  { %539 = vmatmul.f32.gmra.mxu3 %v1479_v34  ;;  %889 = vmatpush.msra.mxu1 %v1455_v2 }
 0x161   :  { %789 = vmatpush.msra.mxu2 %v749_v33  ;;  %823 = vmatpush.msra.mxu3 %v705_v29 }
 0x162   :  { %891 = vmatpush.msra.mxu1 %v703_v27 }
 0x163   :  { %792 = vmatpush.msra.mxu2 %v755_v36 }
 0x164   :  { %494 = vmatmul.f32.gmra.mxu2 %v493_v45  ;;  %569 = vmatmul.f32.vlgmr.msra.gmra.mxu0 %v1469_v26 }
 0x165   :  { %607 = vmatmul.f32.gmra.mxu1 %v491_v13  ;;  %852 = vmatpush.msra.mxu0 %v738_v19 }
 0x166   :  { %893 = vmatpush.msra.mxu1 %v705_v29 }
 0x167   :  { %856 = vmatpush.msra.mxu0 %v744_v0 }
 0x168   :  { %669 = vmatmul.f32.vlgmr.msrb.gmra.mxu3 %v1453_v15 }
 0x169   :  { %860 = vmatpush.msra.mxu0 %v750_v30 }
 0x16b   :  { %864 = vmatpush.msra.mxu0 %v756_v38 }
 0x16c   :  { %640 = vmatmul.f32.vlgmr.msrb.gmra.mxu2 %v1453_v15  ;;  %574 = vmatmul.f32.gmra.mxu0 %v490_v31 }
 0x16d   :  { %761 = vmatmul.f32.vlgmr.msrb.gmra.mxu1 %v1453_v15 }
 0x170   :  { %673 = vmatmul.f32.gmra.mxu3 %v1479_v34 }
 0x174   :  { %644 = vmatmul.f32.gmra.mxu2 %v1479_v34  ;;  %712 = vmatmul.f32.vlgmr.msrb.gmra.mxu0 %v485_v41 }
 0x175   :  { %765 = vmatmul.f32.gmra.mxu1 %v1479_v34 }
 0x178   :  { %827 = vmatmul.f32.vlgmr.msra.gmra.mxu3 %v1484_v35 }
 0x17c   :  { %795 = vmatmul.f32.vlgmr.msra.gmra.mxu2 %v1469_v26  ;;  %720 = vmatmul.f32.gmra.mxu0 %v493_v45 }
 0x17d   :  { %895 = vmatmul.f32.vlgmr.msra.gmra.mxu1 %v1453_v15 }
 0x180   :  { %833 = vmatmul.f32.gmra.mxu3 %v491_v13 }
 0x184   :  { %800 = vmatmul.f32.gmra.mxu2 %v490_v31  ;;  %866 = vmatmul.f32.vlgmr.msra.gmra.mxu0 %v1453_v15 }
 0x185   :  { %899 = vmatmul.f32.gmra.mxu1 %v1479_v34 }
 0x18c   :  { %870 = vmatmul.f32.gmra.mxu0 %v1479_v34 }
 0x1bf   :  { %v308_v47 = vpop.f32.mrf.mxu3 }
 0x1c1   :  { %v304_v46 = vpop.f32.mrf.mxu1 }
 0x1c7   :  { %v263_v48 = vpop.f32.mrf.mxu2 }
 0x1c8   :  { %v264_v58 = vadd.f32 %v1001_v49, %v263_v48 }
 0x1c9   :  { %v255_v50 = vpop.f32.mrf.mxu0 }
 0x1ca   :  { %v256_v51 = vadd.f32 %v1001_v49, %v255_v50  ;;  %v438_v52 = vpop.f32.mrf.mxu1  ;;  %v309_v1 = vadd.f32 %v308_v47, %v264_v58 }
 0x1cb   :  { %v370_v53 = vpop.f32.mrf.mxu3 }
 0x1cc   :  { %v305_v54 = vadd.f32 %v304_v46, %v256_v51 }
 0x1cf   :  { %v338_v55 = vpop.f32.mrf.mxu2 }
 0x1d0   :  { %v339_v56 = vadd.f32 %v338_v55, %v305_v54 }
 0x1d1   :  { %v409_v57 = vpop.f32.mrf.mxu0 }
 0x1d2   :  { %v371_v59 = vadd.f32 %v370_v53, %v339_v56  ;;  %v442_v60 = vpop.f32.mrf.mxu1 }
 0x1d3   :  { %v376_v61 = vpop.f32.mrf.mxu3 }
 0x1d4   :  { %v410_v62 = vadd.f32 %v409_v57, %v371_v59 }
 0x1d6   :  { %v439_v63 = vadd.f32 %v438_v52, %v410_v62 }
 0x1d7   :  { %v343_v3 = vpop.f32.mrf.mxu2 }
 0x1d8   :  { %445 = vst.msk [vmem:[#allocation12] sm:$0xff] %vm119_vm0, %v439_v63  ;;  %v344_v18 = vadd.f32 %v343_v3, %v309_v1 }
 0x1d9   :  { %v413_v4 = vpop.f32.mrf.mxu0 }
 0x1da   :  { %v377_v5 = vadd.f32 %v376_v61, %v344_v18  ;;  %v602_v6 = vpop.f32.mrf.mxu1 }
 0x1db   :  { %v536_v7 = vpop.f32.mrf.mxu3 }
 0x1dc   :  { %v414_v8 = vadd.f32 %v413_v4, %v377_v5 }
 0x1de   :  { %v443_v9 = vadd.f32 %v442_v60, %v414_v8 }
 0x1df   :  { %v487_v11 = vpop.f32.mrf.mxu2 }
 0x1e0   :  { %446 = vst.msk [vmem:[#allocation12 + $0x8] sm:$0xff] %vm119_vm0, %v443_v9  ;;  %v488_v14 = vadd.f32 %v1002_v10, %v487_v11 }
 0x1e1   :  { %v570_v12 = vpop.f32.mrf.mxu0  ;;  %930 = dma.vmem_to_hbm [thread:$0]  %s923_s9, 256, %s925_s18, [#allocation13], %s1244_s1, %s1244_s1, %s1245_s16  }
 0x1e2   :  { %v608_v16 = vpop.f32.mrf.mxu1  ;;  %v537_v2 = vadd.f32 %v536_v7, %v488_v14 }
 0x1e3   :  { %v540_v15 = vpop.f32.mrf.mxu3 }
 0x1e4   :  { %v571_v21 = vadd.f32 %v570_v12, %v537_v2 }
 0x1e6   :  { %v603_v17 = vadd.f32 %v602_v6, %v571_v21 }
 0x1e7   :  { %v495_v19 = vpop.f32.mrf.mxu2 }
 0x1e8   :  { %v496_v22 = vadd.f32 %v1002_v10, %v495_v19 }
 0x1e9   :  { %v575_v20 = vpop.f32.mrf.mxu0 }
 0x1ea   :  { %v762_v26 = vpop.f32.mrf.mxu1  ;;  %v541_v27 = vadd.f32 %v540_v15, %v496_v22 }
 0x1eb   :  { %v670_v25 = vpop.f32.mrf.mxu3 }
 0x1ec   :  { %v576_v0 = vadd.f32 %v575_v20, %v541_v27 }
 0x1ee   :  { %v609_v35 = vadd.f32 %v608_v16, %v576_v0 }
 0x1ef   :  { %v641_v28 = vpop.f32.mrf.mxu2 }
 0x1f0   :  { %v642_v24 = vadd.f32 %v641_v28, %v603_v17 }
 0x1f1   :  { %v713_v29 = vpop.f32.mrf.mxu0 }
 0x1f2   :  { %v671_v33 = vadd.f32 %v670_v25, %v642_v24  ;;  %v766_v36 = vpop.f32.mrf.mxu1  ;;  %v714_v38 = vadd.f32 %v1003_v23, %v713_v29 }
 0x1f3   :  { %v674_v34 = vpop.f32.mrf.mxu3 }
 0x1f4   :  { %677 = vst.msk [vmem:[#allocation14] sm:$0xff] %vm119_vm0, %v671_v33  ;;  %v763_v42 = vadd.f32 %v762_v26, %v714_v38 }
 0x1f7   :  { %v645_v30 = vpop.f32.mrf.mxu2 }
 0x1f8   :  { %v646_v32 = vadd.f32 %v645_v30, %v609_v35 }
 0x1f9   :  { %v721_v37 = vpop.f32.mrf.mxu0 }
 0x1fa   :  { %v675_v31 = vadd.f32 %v674_v34, %v646_v32  ;;  %v896_v13 = vpop.f32.mrf.mxu1  ;;  %v722_v44 = vadd.f32 %v1003_v23, %v721_v37 }
 0x1fb   :  { %v828_v39 = vpop.f32.mrf.mxu3 }
 0x1fc   :  { %678 = vst.msk [vmem:[#allocation14 + $0x8] sm:$0xff] %vm119_vm0, %v675_v31  ;;  %v767_v47 = vadd.f32 %v766_v36, %v722_v44 }
 0x1fd   :  { %943 = dma.vmem_to_hbm [thread:$0]  %s936_s0, 256, %s938_s23, [#allocation13], %s1244_s1, %s1244_s1, %s1245_s16  }
 0x1ff   :  { %v796_v43 = vpop.f32.mrf.mxu2 }
 0x200   :  { %v797_v40 = vadd.f32 %v796_v43, %v763_v42 }
 0x201   :  { %v867_v41 = vpop.f32.mrf.mxu0 }
 0x202   :  { %v829_v45 = vadd.f32 %v828_v39, %v797_v40  ;;  %v900_v54 = vpop.f32.mrf.mxu1 }
 0x203   :  { %v834_v50 = vpop.f32.mrf.mxu3 }
 0x204   :  { %v868_v46 = vadd.f32 %v867_v41, %v829_v45 }
 0x206   :  { %v897_v48 = vadd.f32 %v896_v13, %v868_v46 }
 0x207   :  { %v801_v49 = vpop.f32.mrf.mxu2 }
 0x208   :  { %903 = vst.msk [vmem:[#allocation15] sm:$0xff] %vm119_vm0, %v897_v48  ;;  %v802_v51 = vadd.f32 %v801_v49, %v767_v47 }
 0x209   :  { %v871_v52 = vpop.f32.mrf.mxu0 }
 0x20a   :  { %v835_v53 = vadd.f32 %v834_v50, %v802_v51 }
 0x20c   :  { %v872_v55 = vadd.f32 %v871_v52, %v835_v53 }
 0x20e   :  { %v901_v56 = vadd.f32 %v900_v54, %v872_v55 }
 0x210   :  { %904 = vst.msk [vmem:[#allocation15 + $0x8] sm:$0xff] %vm119_vm0, %v901_v56 }
 0x211   :  { %956 = dma.vmem_to_hbm [thread:$0]  %s949_s11, 256, %s951_s25, [#allocation16], %s1244_s1, %s1244_s1, %s1245_s16  }
 0x212   :  { %1236 = dma.done.wait [#allocation4], 256  }
 0x213   :  { %1237 = vsyncadd [#allocation4], 4294967040 }
 0x214   :  { %1238 = dma.done.wait [#allocation13], 512  }
 0x215   :  { %1239 = vsyncadd [#allocation13], 4294966784 }
 0x216   :  { %1240 = dma.done.wait [#allocation16], 256  }
 0x217   :  { %1241 = vsyncadd [#allocation16], 4294967040 }
 0x218   :  { %973 = vsyncpa [#allocation3], 1 }
 0x219   :  { %974 = vsyncpa [#allocation6], 1 }
 0x21a   :  { %975 = vsyncpa [#allocation9], 1 }
 0x21b   :  { %976 = vsyncpa [#allocation4], 1 }
 0x21c   :  { %977 = vsyncpa [#allocation13], 1 }
 0x21d   :  { %978 = vsyncpa [#allocation16], 1 }

</bundles_post_ra>
